<compile_context>
chip_gen: v7x
topology: tpu7x:2x2x1
jax: 0.10.0
libtpu: 0.0.40
codegen_flags: <defaults>
</compile_context>

<pallas_src>
import jax
import jax.numpy as jnp
import numpy as np
from jax import lax
from jax.experimental import pallas as pl
from jax.experimental.pallas import tpu as pltpu


# ----------------------------------------------------------------------------
# Kernel
# ----------------------------------------------------------------------------
def _film_lookup_kernel(action_ref, state_ref, table_ref, out_ref):
    # action_ref : (TB, 1)   int32  action ids for this batch tile
    # state_ref  : (TB, F)   f32/bf16 state embedding tile
    # table_ref  : (A, 4F)   f32    per-action FiLM table, VMEM-resident
    #                               columns = [tanh(g1)+1 | b1 | tanh(g2)+1 | b2]
    # out_ref    : (TB, F)
    TB, F = out_ref.shape
    A = table_ref.shape[0]

    # One-hot row gather on the MXU (exact: selects one table row per sample).
    ids = action_ref[...]                                        # (TB, 1) i32
    iota = lax.broadcasted_iota(jnp.int32, (TB, A), 1)           # (TB, A)
    onehot = (iota == ids).astype(jnp.float32)                   # (TB, A)
    rows = jnp.dot(onehot, table_ref[...],
                   preferred_element_type=jnp.float32)           # (TB, 4F)

    # 128-aligned lane slices (F % 128 == 0 required).
    g1 = rows[:, 0 * F:1 * F]
    b1 = rows[:, 1 * F:2 * F]
    g2 = rows[:, 2 * F:3 * F]
    b2 = rows[:, 3 * F:4 * F]

    # FiLM x2 with residuals folded into gamma, then ReLU (pure VPU work).
    x = state_ref[...].astype(jnp.float32)
    out = g1 * x + b1
    out = g2 * out + b2
    out_ref[...] = jnp.maximum(out, 0.0).astype(out_ref.dtype)


# ----------------------------------------------------------------------------
# Parameter prep: fold the four FiLM linears + tanh + residual into one table
# ----------------------------------------------------------------------------
def prepare_film_table(params):
    """(A, 4F) f32 table: [tanh(Wg1 a + bg1)+1 | Wb1 a + bb1 | tanh(Wg2 a+bg2)+1 | Wb2 a + bb2]."""
    emb = params["emb"].astype(jnp.float32)                       # (A, F)
    gt1 = jnp.tanh(emb @ params["Wg1"].T + params["bg1"]) + 1.0
    be1 = emb @ params["Wb1"].T + params["bb1"]
    gt2 = jnp.tanh(emb @ params["Wg2"].T + params["bg2"]) + 1.0
    be2 = emb @ params["Wb2"].T + params["bb2"]
    return jnp.concatenate([gt1, be1, gt2, be2], axis=1)          # (A, 4F)


# ----------------------------------------------------------------------------
# Wrapper
# ----------------------------------------------------------------------------
def state_action_encoder_forward(state_emb, action, film_table, *, block_b=128):
    """state_emb: (B, F); action: (B, K) int (only column 0 used); film_table: (A, 4F)."""
    B, F = state_emb.shape
    assert F % 128 == 0, "feature_size must be a multiple of 128 (lane-dense layout)"
    A, F4 = film_table.shape
    assert F4 == 4 * F

    ids = action[:, 0].reshape(B, 1).astype(jnp.int32)

    # Batch tile: multiple of 8 sublanes, capped by block_b; pad B up to a
    # multiple of the tile so every grid step is a full lane/sublane-dense tile.
    TB = min(block_b, max(8, ((B + 7) // 8) * 8))
    Bp = ((B + TB - 1) // TB) * TB
    if Bp != B:
        state_emb = jnp.pad(state_emb, ((0, Bp - B), (0, 0)))
        ids = jnp.pad(ids, ((0, Bp - B), (0, 0)))

    grid = (Bp // TB,)
    out = pl.pallas_call(
        _film_lookup_kernel,
        out_shape=jax.ShapeDtypeStruct((Bp, F), state_emb.dtype),
        grid_spec=pltpu.PrefetchScalarGridSpec(
            num_scalar_prefetch=0,
            grid=grid,
            in_specs=[
                pl.BlockSpec((TB, 1), lambda i: (i, 0)),       # action ids (streamed)
                pl.BlockSpec((TB, F), lambda i: (i, 0)),       # state tile (streamed)
                pl.BlockSpec((A, 4 * F), lambda i: (0, 0)),    # FiLM table (resident)
            ],
            out_specs=pl.BlockSpec((TB, F), lambda i: (i, 0)),
        ),
        compiler_params=pltpu.CompilerParams(
            dimension_semantics=("parallel",),                 # megacore split on v7x
        ),
    )(ids, state_emb, film_table)
    return out[:B]


# ----------------------------------------------------------------------------
# Pure-JAX reference (mirrors the PyTorch forward exactly)
# ----------------------------------------------------------------------------
def reference_forward(state_emb, action, params):
    ids = action[:, 0].astype(jnp.int32)
    action_emb = jnp.take(params["emb"], ids, axis=0)             # (B, F)
    g1 = jnp.tanh(action_emb @ params["Wg1"].T + params["bg1"])
    be1 = action_emb @ params["Wb1"].T + params["bb1"]
    out = g1 * state_emb + be1 + state_emb
    g2 = jnp.tanh(action_emb @ params["Wg2"].T + params["bg2"])
    be2 = action_emb @ params["Wb2"].T + params["bb2"]
    out = g2 * out + be2 + out
    return jnp.maximum(out, 0.0)


def init_params(key, action_size=16, feature_size=128):
    F = feature_size
    ks = jax.random.split(key, 9)
    s = 1.0 / np.sqrt(F)

    def u(k, shape):
        return jax.random.uniform(k, shape, jnp.float32, minval=-s, maxval=s)

    return {
        "emb": jax.random.normal(ks[0], (action_size, F), jnp.float32) * 0.1,
        "Wg1": u(ks[1], (F, F)), "bg1": u(ks[2], (F,)),
        "Wb1": u(ks[3], (F, F)), "bb1": u(ks[4], (F,)),
        "Wg2": u(ks[5], (F, F)), "bg2": u(ks[6], (F,)),
        "Wb2": u(ks[7], (F, F)), "bb2": u(ks[8], (F,)),
    }


if __name__ == "__main__":
    key = jax.random.PRNGKey(0)
    k_par, k_state, k_act = jax.random.split(key, 3)

    B = 256           # batch (2 grid tiles of 128 rows -> exercises streaming)
    F = 128           # feature_size (module default is 512; any multiple of 128 works)
    A = 16            # action_size

    params = init_params(k_par, action_size=A, feature_size=F)
    film_table = prepare_film_table(params)                       # (A, 4F), done once

    state_emb = jax.random.normal(k_state, (B, F), jnp.float32)
    action = jax.random.randint(k_act, (B, 1), 0, A, dtype=jnp.int32)

    out = state_action_encoder_forward(state_emb, action, film_table, block_b=128)
    out = jax.block_until_ready(out)

    ref = reference_forward(state_emb, action, params)
    err = float(jnp.max(jnp.abs(out - ref)))
    assert out.shape == (B, F), out.shape
    assert err < 1e-3, f"mismatch vs reference: {err}"

    print("KERNEL_OK")
</pallas_src>

<mosaic_0001>
module attributes {stable_mosaic.version = 11 : i64} {
  func.func @_film_lookup_kernel(%arg0: i32, %arg1: memref<128x1xi32, #tpu.memory_space<vmem>>, %arg2: memref<128x128xf32, #tpu.memory_space<vmem>>, %arg3: memref<16x512xf32, #tpu.memory_space<vmem>>, %arg4: memref<128x128xf32, #tpu.memory_space<vmem>>) attributes {dimension_semantics = [#tpu.dimension_semantics<parallel>], iteration_bounds = array<i64: 2>, scalar_prefetch = 0 : i64, scratch_operands = 0 : i64, tpu.core_type = #tpu.core_type<tc>, window_params = [{transform_indices = @transform_0, window_bounds = array<i64: 128, 1>}, {transform_indices = @transform_1, window_bounds = array<i64: 128, 128>}, {pipeline_mode = #tpu.pipeline_mode<synchronous>, transform_indices = @transform_2, window_bounds = array<i64: 16, 512>}, {transform_indices = @transform_3, window_bounds = array<i64: 128, 128>}]} {
    %c0 = arith.constant 0 : index
    %c0_0 = arith.constant 0 : index
    %0 = vector.load %arg1[%c0, %c0_0] : memref<128x1xi32, #tpu.memory_space<vmem>>, vector<128x1xi32>
    %1 = tpu.iota {dimensions = array<i32: 1>} : vector<128x16xi32>
    %2 = vector.broadcast %0 : vector<128x1xi32> to vector<128x16xi32>
    %3 = arith.cmpi eq, %1, %2 : vector<128x16xi32>
    %4 = arith.extui %3 : vector<128x16xi1> to vector<128x16xi32>
    %5 = arith.sitofp %4 : vector<128x16xi32> to vector<128x16xf32>
    %c0_1 = arith.constant 0 : index
    %c0_2 = arith.constant 0 : index
    %6 = vector.load %arg3[%c0_1, %c0_2] : memref<16x512xf32, #tpu.memory_space<vmem>>, vector<16x512xf32>
    %cst = arith.constant dense<0.000000e+00> : vector<128x512xf32>
    %7 = tpu.matmul %5, %6, %cst {dimension_numbers = #tpu.dot_dimension_numbers<[1], [0], [0], [1], [0, 0, 1, 1], [], []>} : vector<128x16xf32>, vector<16x512xf32>, vector<128x512xf32> -> vector<128x512xf32>
    %8 = vector.extract_strided_slice %7 {offsets = [0, 0], sizes = [128, 128], strides = [1, 1]} : vector<128x512xf32> to vector<128x128xf32>
    %9 = vector.extract_strided_slice %7 {offsets = [0, 128], sizes = [128, 128], strides = [1, 1]} : vector<128x512xf32> to vector<128x128xf32>
    %10 = vector.extract_strided_slice %7 {offsets = [0, 256], sizes = [128, 128], strides = [1, 1]} : vector<128x512xf32> to vector<128x128xf32>
    %11 = vector.extract_strided_slice %7 {offsets = [0, 384], sizes = [128, 128], strides = [1, 1]} : vector<128x512xf32> to vector<128x128xf32>
    %c0_3 = arith.constant 0 : index
    %c0_4 = arith.constant 0 : index
    %12 = vector.load %arg2[%c0_3, %c0_4] : memref<128x128xf32, #tpu.memory_space<vmem>>, vector<128x128xf32>
    %13 = arith.mulf %8, %12 : vector<128x128xf32>
    %14 = arith.addf %13, %9 : vector<128x128xf32>
    %15 = arith.mulf %10, %14 : vector<128x128xf32>
    %16 = arith.addf %15, %11 : vector<128x128xf32>
    %cst_5 = arith.constant 0.000000e+00 : f32
    %17 = vector.broadcast %cst_5 : f32 to vector<128x128xf32>
    %18 = arith.maximumf %16, %17 : vector<128x128xf32>
    %c0_6 = arith.constant 0 : index
    %c0_7 = arith.constant 0 : index
    %19 = vector.load %arg4[%c0_6, %c0_7] : memref<128x128xf32, #tpu.memory_space<vmem>>, vector<128x128xf32>
    tpu.vector_store %arg4[%c0_6, %c0_7], %18 {strides = array<i32>} : memref<128x128xf32, #tpu.memory_space<vmem>>, vector<128x128xf32>,
    return
  }
  func.func @transform_0(%arg0: i32) -> (i32, i32) {
    %c0_i32 = arith.constant 0 : i32
    %c0_i32_0 = arith.constant 0 : i32
    return %arg0, %c0_i32 : i32, i32
  }
  func.func @transform_1(%arg0: i32) -> (i32, i32) {
    %c0_i32 = arith.constant 0 : i32
    %c0_i32_0 = arith.constant 0 : i32
    return %arg0, %c0_i32 : i32, i32
  }
  func.func @transform_2(%arg0: i32) -> (i32, i32) {
    %c0_i32 = arith.constant 0 : i32
    %c0_i32_0 = arith.constant 0 : i32
    %c0_i32_1 = arith.constant 0 : i32
    return %c0_i32, %c0_i32_0 : i32, i32
  }
  func.func @transform_3(%arg0: i32) -> (i32, i32) {
    %c0_i32 = arith.constant 0 : i32
    %c0_i32_0 = arith.constant 0 : i32
    return %arg0, %c0_i32 : i32, i32
  }
}

</mosaic_0001>

<bundles_post_ra>
// kernel: tpu_custom_call.1
= control target key start
LH: loop header
LB: loop body
LE: loop exit
PB: predicated region body
PF: predicated region fallthrough
CT: control target
= control target key end

     0   :  { %8 = vsyncpa [#allocation3], 0  ;;  %s1473_s0 = inlined_call_operand.vmem [shape: s32[256,1], index: 0, kind: input, shape index: {}]   ;;  %s1474_s1 = inlined_call_operand.vmem [shape: f32[256,128], index: 1, kind: input, shape index: {}]   ;;  %s1475_s2 = inlined_call_operand.hbm [shape: f32[16,512], index: 2, kind: input, shape index: {}]   ;;  %s1476_s3 = inlined_call_operand.hbm [shape: f32[256,128], index: 3, kind: output, shape index: {}]  }
   0x1   :  { %9 = vsyncpa [#allocation4], 0 }
   0x2   :  { %11 = vsyncpa [#allocation4 + $0x1], 0  ;;  %s1169_s12 = smov 0   ;;  %s1171_s13 = smov 0  }
   0x3   :  { %s1173_s14 = smov 0   ;;  %s1175_s15 = smov 0  }
   0x4 LB: > { %s1190_s16 = sadd.s32 4294967295, %s1139_s15   ;;  %s914_s17 = sadd.s32 4294967294, %s1139_s15   ;;  %s1139_s15 = sphi %s1175_s15, %s1492_s15   ;;  %s1135_s14 = sphi %s1173_s14, %s1491_s14   ;;  %s1131_s13 = sphi %s1171_s13, %s1490_s13   ;;  %s1127_s12 = sphi %s1169_s12, %s1489_s12  }
   0x5   : > { %s1194_s18 = sadd.s32 1, %s1139_s15   ;;  %s97_s19 = sadd.s32 1, %s1135_s14 }
   0x6   : > { %s94_s20 = ssub.s32 %s1139_s15, %s1194_s18  ;;  %p107_p0 = scmp.ne.s32.totalorder %s1135_s14, %s1131_s13 }
   0x7   : > { %p95_p1 = scmp.eq.s32.totalorder %s94_s20, 0  ;;  %p108_p2 = scmp.eq.s32.totalorder %s1190_s16, 1 }
   0x8   : > { %p113_p3 = scmp.ne.s32.totalorder %s1131_s13, %s1127_s12  ;;  %p114_p4 = scmp.eq.s32.totalorder %s914_s17, 1 }
   0x9   : > { %s1205_s21 = scalar_select %p95_p1, %s1135_s14, %s97_s19  }
   0xa   : > { %p1207_p5 = por %p108_p2, %p107_p0  ;;  %p1211_p6 = por %p114_p4, %p113_p3 }
   0xb   : > { %p915_p7 = scmp.ge.s32.totalorder %s1139_s15, 1  ;;  %p121_p8 = scmp.lt.s32.totalorder %s1139_s15, 3 }
   0xc   : > { %s1480_s22 = scalar_select %p1207_p5, 1, 0 }
   0xd   : > { %s1481_s23 = scalar_select %p1211_p6, 1, 0 }
   0xe   : > { %p1477_p9 = scmp.eq.s32.totalorder %s1190_s16, 0  ;;  %p1218_p10 = pnand %p915_p7, %p121_p8 }
   0xf   : > { %s1141_s25 = smov [#allocation2]   ;;  %s1045_s30 = scalar_lea.hbm %s1475_s2, 1024 }
  0x10   : > { %s1482_s24 = scalar_select %p1218_p10, 1, 0 }
  0x11   : > { %s133_s26 = sshll.u32 %s1141_s25, 4  ;;  %p993_p11 = pneg %p1218_p10  ;;  %s134_s26 = int_to_ptr.vmem [resolvable:$true] %s133_s26 }
  0x12   : > { %p1046_p13 = scmp.ne.s32.totalorder %s1475_s2, %s1045_s30  ;;  %p1052_p3 = scmp.lt.u32.totalorder %s1045_s30, %s1475_s2 }
  0x13   : > { %p1226_p12 = pnand %p1477_p9, %p993_p11 }
  0x15   : > { %p1047_p0 = pneg %p1226_p12 }
  0x17   : > { %p1048_p1 = pnand %p1047_p0, %p1046_p13 }
  0x19   : > { %p1049_p2 = pneg %p1048_p1 }
  0x1b   : > { %p1054_p4 = pnand %p1052_p3, %p1049_p2 }
  0x1d   : > { %1057 = shalt.err (!%p1054_p4)
}
  0x1e   : > { %s1058_s8 = scalar_lea.vmem %s134_s26, 1024  ;;  %p1066_p9 = scmp.lt.s32.totalorder %s134_s26, %s134_s26 }
  0x1f   : > { %p1059_p7 = scmp.ne.s32.totalorder %s134_s26, %s1058_s8  ;;  %p1067_p6 = scmp.lt.s32.totalorder %s1058_s8, %s1058_s8 }
  0x21   : > { %p1061_p8 = pnand %p1059_p7, %p1047_p0  ;;  %p1068_p5 = por %p1067_p6, %p1066_p9 }
  0x23   : > { %p1062_p11 = pneg %p1061_p8 }
  0x25   : > { %p1069_p10 = pnand %p1068_p5, %p1062_p11 }
  0x27   : > { %1072 = shalt.err (!%p1069_p10)
}
  0x28   : > { %s1142_s9 = smov 512   ;;  %s1143_s10 = smov 32  }
  0x29   : > { %996 = dma.hbm_to_vmem [thread:$0]  (!%p1226_p12), %s1475_s2, 1024, %s134_s26, [#allocation3], %s1142_s9, %s1142_s9, %s1143_s10  }
  0x2a   : > { %p1484_p13 = scmp.ne.s32.totalorder %s1482_s24, 0 }
  0x2b   : > { %p1485_p1 = scmp.eq.s32.totalorder (!%p1484_p13), %s1190_s16, 0 }
  0x2c   : > { %167 = sbr.rel (%p1484_p13) target bundleno = 486 (0x1e6), region = 32 }
  0x33   : > { %1118 = dma.done.wait (%p1485_p1), [#allocation3], 1024   ;;  %p1486_p0 = pmov %p1485_p1 }
  0x34   : > { %s921_s19 = sshll.u32 %s1190_s16, 4  ;;  %v1144_v0 = vmov 0   ;;  %v1145_v1 = vmov 0.0   ;;  %v324_v8 = vld [vmem:[#allocation2 + $0x8] sm:$0xff]  ;;  %v326_v11 = vld [vmem:[#allocation2 + $0x18] sm:$0xff]  ;;  %v323_v13 = vld [vmem:[#allocation2] sm:$0xff]  ;;  %v225_v30 = vlaneseq }
  0x35   : > { %1120 = vsyncadd (%p1486_p0), [#allocation3], 4294966272  ;;  %1044 = vset.pattern.permute.xlu1 %v1144_v0  ;;  %1043 = vset.pattern.permute.xlu0 %v1144_v0  ;;  %p197_p5 = scmp.lt.s32.totalorder %s921_s19, 31  ;;  %v328_v9 = vld [vmem:[#allocation2 + $0x28] sm:$0xff]  ;;  %v330_v12 = vld [vmem:[#allocation2 + $0x38] sm:$0xff]  ;;  %vm331_vm0 = vcmask 130048  }
  0x36   : > { %444 = vmatprep.mubr.f32.mxu0 %v1145_v1  ;;  %605 = vmatprep.mubr.f32.mxu1 %v1145_v1  ;;  %v979_v10 = vpack.c.bf16 %v328_v9, %v324_v8  ;;  %v983_v14 = vpack.c.bf16 %v330_v12, %v326_v11  ;;  %v327_v15 = vld [vmem:[#allocation2 + $0x20] sm:$0xff]  ;;  %v325_v16 = vld [vmem:[#allocation2 + $0x10] sm:$0xff]  ;;  %v1281_v31 = vand.u32 127, %v225_v30  ;;  %s193_s30 = sand.u32 1, %s1131_s13   ;;  %s978_s6 = sshll.u32 %s1190_s16, 11 }
  0x37   : > { %s1494_s19 = smov (!%p197_p5, %s921_s19), 31  ;;  %v329_v17 = vld [vmem:[#allocation2 + $0x30] sm:$0xff]  ;;  %v981_v18 = vpack.c.bf16 %v327_v15, %v323_v13  ;;  %s920_s4 = sshll.u32 %s193_s30, 7 }
  0x38   : > { %s922_s20 = sshll.u32 %s1494_s19, 3  ;;  %980 = vmatprep.subr.bf16.mxu0 %v979_v10  ;;  %v985_v19 = vpack.c.bf16 %v329_v17, %v325_v16  ;;  %984 = vmatprep.subr.bf16.mxu1 %v983_v14  ;;  %s1391_s5 = scalar_lea.vmem [#allocation5], %s920_s4 }
  0x39   : > { %s1263_s26 = scalar_lea.vmem %s1473_s0, %s922_s20  ;;  %982 = vmatpush1.bf16.msra.mxu0 %v981_v18  ;;  %s1382_s29 = scalar_lea.vmem %s1474_s1, %s922_s20 }
  0x3a   : > { %v211_v2 = vld [vmem:[%s1263_s26 + $0x10] sm:$0xff]  ;;  %v209_v3 = vld [vmem:[%s1263_s26] sm:$0xff]  ;;  %v212_v4 = vld [vmem:[%s1263_s26 + $0x18] sm:$0xff]  ;;  %986 = vmatpush1.bf16.msra.mxu1 %v985_v19  ;;  %s828_s7 = sshll.u32 %s1391_s5, 4  ;;  %s1425_s10 = scalar_lea.hbm %s1476_s3, %s978_s6  ;;  %s1427_s7 = int_to_ptr.vmem [resolvable:$true] %s828_s7 }
  0x3b   : > { %234 = vperm.xlu1 %1044, %v211_v2   ;;  %228 = vperm.xlu0 %1043, %v209_v3   ;;  %v210_v5 = vld [vmem:[%s1263_s26 + $0x8] sm:$0xff]  ;;  %v213_v7 = vld [vmem:[%s1263_s26 + $0x20] sm:$0xff]  ;;  %v216_v20 = vld [vmem:[%s1263_s26 + $0x38] sm:$0xff]  ;;  %s1432_s11 = scalar_lea.sflag [#allocation4], %s193_s30  ;;  %s1073_s17 = scalar_lea.vmem %s1427_s7, 2048 }
  0x3c   : > { %v214_v6 = vld [vmem:[%s1263_s26 + $0x28] sm:$0xff]  ;;  %v215_v21 = vld [vmem:[%s1263_s26 + $0x30] sm:$0xff]  ;;  %v217_v23 = vld [vmem:[%s1263_s26 + $0x40] sm:$0xff]  ;;  %p1074_p6 = scmp.ne.s32.totalorder %s1427_s7, %s1073_s17  ;;  %p1487_p9 = scmp.ne.s32.totalorder %s1480_s22, 0 }
  0x3d   : > { %v218_v22 = vld [vmem:[%s1263_s26 + $0x48] sm:$0xff]  ;;  %v220_v24 = vld [vmem:[%s1263_s26 + $0x58] sm:$0xff]  ;;  %v219_v25 = vld [vmem:[%s1263_s26 + $0x50] sm:$0xff]  ;;  %s1146_s16 = smov [#allocation5]  }
  0x3e   : > { %v222_v26 = vld [vmem:[%s1263_s26 + $0x68] sm:$0xff]  ;;  %v221_v27 = vld [vmem:[%s1263_s26 + $0x60] sm:$0xff]  ;;  %v224_v28 = vld [vmem:[%s1263_s26 + $0x78] sm:$0xff]  ;;  %p1075_p10 = pnand %p1074_p6, %p1487_p9  ;;  %s1077_s19 = sshll.u32 %s1146_s16, 4  ;;  %s1078_s19 = int_to_ptr.vmem [resolvable:$false] %s1077_s19 }
  0x3f   : > { %237 = vperm.xlu1 %1044, %v212_v4   ;;  %231 = vperm.xlu0 %1043, %v210_v5   ;;  %v223_v29 = vld [vmem:[%s1263_s26 + $0x70] sm:$0xff]  ;;  %v702_v0 = vld [vmem:[%s1382_s29] sm:$0xff]  ;;  %s1079_s20 = scalar_lea.vmem %s1078_s19, 4096  ;;  %p1080_p2 = scmp.lt.s32.totalorder %s1427_s7, %s1078_s19 }
  0x40   : > { %v704_v14 = vld [vmem:[%s1382_s29 + $0x10] sm:$0xff]  ;;  %p1076_p12 = pneg %p1075_p10  ;;  %p1081_p3 = scmp.lt.s32.totalorder %s1079_s20, %s1073_s17 }
  0x42   : > { %p1082_p4 = por %p1081_p3, %p1080_p2 }
  0x43   : > { %243 = vperm.xlu1 %1044, %v214_v6   ;;  %240 = vperm.xlu0 %1043, %v213_v7  }
  0x44   : > { %p1083_p7 = pnand %p1082_p4, %p1076_p12 }
  0x47   : > { %249 = vperm.xlu1 %1044, %v216_v20   ;;  %246 = vperm.xlu0 %1043, %v215_v21  }
  0x4b   : > { %255 = vperm.xlu1 %1044, %v218_v22   ;;  %252 = vperm.xlu0 %1043, %v217_v23  }
  0x4f   : > { %261 = vperm.xlu1 %1044, %v220_v24   ;;  %258 = vperm.xlu0 %1043, %v219_v25   ;;  %v705_v24 = vld [vmem:[%s1382_s29 + $0x18] sm:$0xff] }
  0x53   : > { %267 = vperm.xlu1 %1044, %v222_v26   ;;  %264 = vperm.xlu0 %1043, %v221_v27  }
  0x57   : > { %273 = vperm.xlu1 %1044, %v224_v28   ;;  %270 = vperm.xlu0 %1043, %v223_v29  }
  0xba   : > { %v229_v32 = vpop.permute.xlu0 %228  ;;  %v235_v34 = vpop.permute.xlu1 %234 }
  0xbb   : > { %vm275_vm1 = vcmp.eq.s32.totalorder %v1281_v31, %v229_v32  ;;  %vm277_vm2 = vcmp.eq.s32.totalorder %v1281_v31, %v235_v34  ;;  %v706_v34 = vld [vmem:[%s1382_s29 + $0x20] sm:$0xff] }
  0xbc   : > { %v925_v33 = vsel %vm275_vm1, 1.0, %v1145_v1  ;;  %v927_v37 = vsel %vm277_vm2, 1.0, %v1145_v1 }
  0xbd   : > { %941 = vmatmul.mubr.msk.f32.vlgmr.msra.gmra.mrb[0].mxu0 %vm331_vm0, %v925_v33  ;;  %957 = vmatmul.mubr.msk.f32.vlgmr.msra.gmra.mrb[0].mxu1 %vm331_vm0, %v925_v33 }
  0xbe   : > { %v232_v35 = vpop.permute.xlu0 %231  ;;  %450 = vmatprep.mubr.f32.mxu0 %v1145_v1  ;;  %611 = vmatprep.mubr.f32.mxu1 %v1145_v1  ;;  %v238_v38 = vpop.permute.xlu1 %237 }
  0xbf   : > { %vm276_vm3 = vcmp.eq.s32.totalorder %v1281_v31, %v232_v35  ;;  %vm278_vm4 = vcmp.eq.s32.totalorder %v1281_v31, %v238_v38 }
  0xc0   : > { %v926_v36 = vsel %vm276_vm3, 1.0, %v1145_v1  ;;  %v928_v40 = vsel %vm278_vm4, 1.0, %v1145_v1 }
  0xc1   : > { %942 = vmatmul.mubr.msk.f32.gmra.mrb[2].mxu0 %vm331_vm0, %v926_v36  ;;  %958 = vmatmul.mubr.msk.f32.gmra.mrb[2].mxu1 %vm331_vm0, %v926_v36 }
  0xc2   : > { %456 = vmatprep.mubr.f32.mxu0 %v1145_v1  ;;  %617 = vmatprep.mubr.f32.mxu1 %v1145_v1  ;;  %v241_v39 = vpop.permute.xlu0 %240  ;;  %v244_v41 = vpop.permute.xlu1 %243 }
  0xc3   : > { %vm279_vm5 = vcmp.eq.s32.totalorder %v1281_v31, %v241_v39  ;;  %vm280_vm6 = vcmp.eq.s32.totalorder %v1281_v31, %v244_v41 }
  0xc4   : > { %v929_v42 = vsel %vm279_vm5, 1.0, %v1145_v1  ;;  %v930_v44 = vsel %vm280_vm6, 1.0, %v1145_v1 }
  0xc5   : > { %943 = vmatmul.mubr.msk.f32.gmra.mrb[4].mxu0 %vm331_vm0, %v927_v37  ;;  %959 = vmatmul.mubr.msk.f32.gmra.mrb[4].mxu1 %vm331_vm0, %v927_v37 }
  0xc6   : > { %462 = vmatprep.mubr.f32.mxu0 %v1145_v1  ;;  %623 = vmatprep.mubr.f32.mxu1 %v1145_v1  ;;  %v247_v43 = vpop.permute.xlu0 %246  ;;  %v250_v45 = vpop.permute.xlu1 %249 }
  0xc7   : > { %vm281_vm7 = vcmp.eq.s32.totalorder %v1281_v31, %v247_v43  ;;  %vm282_vm8 = vcmp.eq.s32.totalorder %v1281_v31, %v250_v45 }
  0xc8   : > { %v931_v46 = vsel %vm281_vm7, 1.0, %v1145_v1  ;;  %v932_v48 = vsel %vm282_vm8, 1.0, %v1145_v1 }
  0xc9   : > { %944 = vmatmul.mubr.msk.f32.gmra.mrb[6].mxu0 %vm331_vm0, %v928_v40  ;;  %960 = vmatmul.mubr.msk.f32.gmra.mrb[6].mxu1 %vm331_vm0, %v928_v40 }
  0xca   : > { %468 = vmatprep.mubr.f32.mxu0 %v1145_v1  ;;  %629 = vmatprep.mubr.f32.mxu1 %v1145_v1  ;;  %v253_v47 = vpop.permute.xlu0 %252  ;;  %v256_v49 = vpop.permute.xlu1 %255 }
  0xcb   : > { %vm283_vm9 = vcmp.eq.s32.totalorder %v1281_v31, %v253_v47  ;;  %vm284_vm10 = vcmp.eq.s32.totalorder %v1281_v31, %v256_v49 }
  0xcc   : > { %v933_v50 = vsel %vm283_vm9, 1.0, %v1145_v1  ;;  %v934_v52 = vsel %vm284_vm10, 1.0, %v1145_v1 }
  0xcd   : > { %945 = vmatmul.mubr.msk.f32.gmra.mrb[8].mxu0 %vm331_vm0, %v929_v42  ;;  %961 = vmatmul.mubr.msk.f32.gmra.mrb[8].mxu1 %vm331_vm0, %v929_v42 }
  0xce   : > { %474 = vmatprep.mubr.f32.mxu0 %v1145_v1  ;;  %635 = vmatprep.mubr.f32.mxu1 %v1145_v1  ;;  %v259_v51 = vpop.permute.xlu0 %258  ;;  %v262_v53 = vpop.permute.xlu1 %261 }
  0xcf   : > { %vm285_vm11 = vcmp.eq.s32.totalorder %v1281_v31, %v259_v51  ;;  %vm286_vm12 = vcmp.eq.s32.totalorder %v1281_v31, %v262_v53 }
  0xd0   : > { %v935_v54 = vsel %vm285_vm11, 1.0, %v1145_v1  ;;  %v936_v56 = vsel %vm286_vm12, 1.0, %v1145_v1 }
  0xd1   : > { %946 = vmatmul.mubr.msk.f32.gmra.mrb[10].mxu0 %vm331_vm0, %v930_v44  ;;  %962 = vmatmul.mubr.msk.f32.gmra.mrb[10].mxu1 %vm331_vm0, %v930_v44  ;;  %v707_v44 = vld [vmem:[%s1382_s29 + $0x28] sm:$0xff] }
  0xd2   : > { %480 = vmatprep.mubr.f32.mxu0 %v1145_v1  ;;  %641 = vmatprep.mubr.f32.mxu1 %v1145_v1  ;;  %v265_v55 = vpop.permute.xlu0 %264  ;;  %v268_v57 = vpop.permute.xlu1 %267 }
  0xd3   : > { %vm287_vm13 = vcmp.eq.s32.totalorder %v1281_v31, %v265_v55  ;;  %vm288_vm14 = vcmp.eq.s32.totalorder %v1281_v31, %v268_v57 }
  0xd4   : > { %v937_v58 = vsel %vm287_vm13, 1.0, %v1145_v1  ;;  %v938_v60 = vsel %vm288_vm14, 1.0, %v1145_v1 }
  0xd5   : > { %947 = vmatmul.mubr.msk.f32.gmra.mrb[12].mxu0 %vm331_vm0, %v931_v46  ;;  %963 = vmatmul.mubr.msk.f32.gmra.mrb[12].mxu1 %vm331_vm0, %v931_v46 }
  0xd6   : > { %486 = vmatprep.mubr.f32.mxu0 %v1145_v1  ;;  %647 = vmatprep.mubr.f32.mxu1 %v1145_v1  ;;  %v271_v59 = vpop.permute.xlu0 %270  ;;  %v274_v61 = vpop.permute.xlu1 %273 }
  0xd7   : > { %vm289_vm15 = vcmp.eq.s32.totalorder %v1281_v31, %v271_v59  ;;  %vm290_vm1 = vcmp.eq.s32.totalorder %v1281_v31, %v274_v61 }
  0xd8   : > { %v939_v62 = vsel %vm289_vm15, 1.0, %v1145_v1  ;;  %v940_v63 = vsel %vm290_vm1, 1.0, %v1145_v1 }
  0xd9   : > { %948 = vmatmul.mubr.msk.f32.gmra.mrb[14].mxu0 %vm331_vm0, %v932_v48  ;;  %964 = vmatmul.mubr.msk.f32.gmra.mrb[14].mxu1 %vm331_vm0, %v932_v48 }
  0xda   : > { %492 = vmatprep.mubr.f32.mxu0 %v1145_v1  ;;  %653 = vmatprep.mubr.f32.mxu1 %v1145_v1 }
  0xdd   : > { %949 = vmatmul.mubr.msk.f32.gmra.mrb[16].mxu0 %vm331_vm0, %v933_v50  ;;  %965 = vmatmul.mubr.msk.f32.gmra.mrb[16].mxu1 %vm331_vm0, %v933_v50 }
  0xde   : > { %498 = vmatprep.mubr.f32.mxu0 %v1145_v1  ;;  %659 = vmatprep.mubr.f32.mxu1 %v1145_v1 }
  0xe1   : > { %950 = vmatmul.mubr.msk.f32.gmra.mrb[18].mxu0 %vm331_vm0, %v934_v52  ;;  %966 = vmatmul.mubr.msk.f32.gmra.mrb[18].mxu1 %vm331_vm0, %v934_v52 }
  0xe2   : > { %504 = vmatprep.mubr.f32.mxu0 %v1145_v1  ;;  %665 = vmatprep.mubr.f32.mxu1 %v1145_v1 }
  0xe5   : > { %951 = vmatmul.mubr.msk.f32.gmra.mrb[20].mxu0 %vm331_vm0, %v935_v54  ;;  %967 = vmatmul.mubr.msk.f32.gmra.mrb[20].mxu1 %vm331_vm0, %v935_v54  ;;  %v708_v54 = vld [vmem:[%s1382_s29 + $0x30] sm:$0xff] }
  0xe6   : > { %510 = vmatprep.mubr.f32.mxu0 %v1145_v1  ;;  %671 = vmatprep.mubr.f32.mxu1 %v1145_v1 }
  0xe9   : > { %952 = vmatmul.mubr.msk.f32.gmra.mrb[22].mxu0 %vm331_vm0, %v936_v56  ;;  %968 = vmatmul.mubr.msk.f32.gmra.mrb[22].mxu1 %vm331_vm0, %v936_v56 }
  0xea   : > { %516 = vmatprep.mubr.f32.mxu0 %v1145_v1  ;;  %677 = vmatprep.mubr.f32.mxu1 %v1145_v1 }
  0xed   : > { %953 = vmatmul.mubr.msk.f32.gmra.mrb[24].mxu0 %vm331_vm0, %v937_v58  ;;  %969 = vmatmul.mubr.msk.f32.gmra.mrb[24].mxu1 %vm331_vm0, %v937_v58 }
  0xee   : > { %522 = vmatprep.mubr.f32.mxu0 %v1145_v1  ;;  %683 = vmatprep.mubr.f32.mxu1 %v1145_v1 }
  0xf1   : > { %954 = vmatmul.mubr.msk.f32.gmra.mrb[26].mxu0 %vm331_vm0, %v938_v60  ;;  %970 = vmatmul.mubr.msk.f32.gmra.mrb[26].mxu1 %vm331_vm0, %v938_v60 }
  0xf2   : > { %528 = vmatprep.mubr.f32.mxu0 %v1145_v1  ;;  %689 = vmatprep.mubr.f32.mxu1 %v1145_v1 }
  0xf5   : > { %955 = vmatmul.mubr.msk.f32.gmra.mrb[28].mxu0 %vm331_vm0, %v939_v62  ;;  %971 = vmatmul.mubr.msk.f32.gmra.mrb[28].mxu1 %vm331_vm0, %v939_v62 }
  0xf6   : > { %534 = vmatprep.mubr.f32.mxu0 %v1145_v1  ;;  %695 = vmatprep.mubr.f32.mxu1 %v1145_v1  ;;  %v703_v1 = vld [vmem:[%s1382_s29 + $0x8] sm:$0xff] }
  0xf9   : > { %956 = vmatmul.mubr.msk.f32.gmra.mrb[30].mxu0 %vm331_vm0, %v940_v63  ;;  %972 = vmatmul.mubr.msk.f32.gmra.mrb[30].mxu1 %vm331_vm0, %v940_v63 }
 0x190   : > { %v446_v2 = vpop.f32.mrb[0].mxu0  ;;  %v607_v3 = vpop.f32.mrb[0].mxu1 }
 0x191   : > { %v718_v4 = vmul.f32 %v702_v0, %v446_v2  ;;  %v448_v5 = vpop.f32.mrb[1].mxu0  ;;  %v609_v6 = vpop.f32.mrb[1].mxu1  ;;  %v709_v0 = vld [vmem:[%s1382_s29 + $0x38] sm:$0xff] }
 0x193   : > { %v734_v7 = vadd.f32 %v718_v4, %v448_v5 }
 0x194   : > { %v452_v8 = vpop.f32.mrb[2].mxu0  ;;  %v613_v9 = vpop.f32.mrb[2].mxu1 }
 0x195   : > { %v750_v10 = vmul.f32 %v734_v7, %v607_v3  ;;  %v719_v11 = vmul.f32 %v703_v1, %v452_v8  ;;  %v454_v12 = vpop.f32.mrb[3].mxu0  ;;  %v615_v13 = vpop.f32.mrb[3].mxu1 }
 0x197   : > { %v766_v15 = vadd.f32 %v750_v10, %v609_v6  ;;  %v735_v16 = vadd.f32 %v719_v11, %v454_v12  ;;  %v710_v10 = vld [vmem:[%s1382_s29 + $0x40] sm:$0xff] }
 0x198   : > { %v458_v17 = vpop.f32.mrb[4].mxu0  ;;  %v619_v18 = vpop.f32.mrb[4].mxu1 }
 0x199   : > { %v782_v19 = vmax.f32 %v766_v15, 0.0  ;;  %v751_v20 = vmul.f32 %v735_v16, %v613_v9  ;;  %v720_v21 = vmul.f32 %v704_v14, %v458_v17  ;;  %v460_v22 = vpop.f32.mrb[5].mxu0  ;;  %v621_v23 = vpop.f32.mrb[5].mxu1 }
 0x19b   : > { %798 = vst [vmem:[%s1391_s5] sm:$0xff] %v782_v19  ;;  %v767_v25 = vadd.f32 %v751_v20, %v615_v13  ;;  %v736_v26 = vadd.f32 %v720_v21, %v460_v22  ;;  %v711_v20 = vld [vmem:[%s1382_s29 + $0x48] sm:$0xff] }
 0x19c   : > { %v464_v27 = vpop.f32.mrb[6].mxu0  ;;  %v625_v28 = vpop.f32.mrb[6].mxu1 }
 0x19d   : > { %v783_v29 = vmax.f32 %v767_v25, 0.0  ;;  %v752_v30 = vmul.f32 %v736_v26, %v619_v18  ;;  %v721_v31 = vmul.f32 %v705_v24, %v464_v27  ;;  %v466_v32 = vpop.f32.mrb[7].mxu0  ;;  %v627_v33 = vpop.f32.mrb[7].mxu1 }
 0x19f   : > { %799 = vst [vmem:[%s1391_s5 + $0x8] sm:$0xff] %v783_v29  ;;  %v768_v35 = vadd.f32 %v752_v30, %v621_v23  ;;  %v737_v36 = vadd.f32 %v721_v31, %v466_v32  ;;  %v712_v30 = vld [vmem:[%s1382_s29 + $0x50] sm:$0xff] }
 0x1a0   : > { %v470_v37 = vpop.f32.mrb[8].mxu0  ;;  %v631_v38 = vpop.f32.mrb[8].mxu1 }
 0x1a1   : > { %v784_v39 = vmax.f32 %v768_v35, 0.0  ;;  %v753_v40 = vmul.f32 %v737_v36, %v625_v28  ;;  %v722_v41 = vmul.f32 %v706_v34, %v470_v37  ;;  %v472_v42 = vpop.f32.mrb[9].mxu0  ;;  %v633_v43 = vpop.f32.mrb[9].mxu1 }
 0x1a3   : > { %800 = vst [vmem:[%s1391_s5 + $0x10] sm:$0xff] %v784_v39  ;;  %v769_v45 = vadd.f32 %v753_v40, %v627_v33  ;;  %v738_v46 = vadd.f32 %v722_v41, %v472_v42  ;;  %v713_v40 = vld [vmem:[%s1382_s29 + $0x58] sm:$0xff] }
 0x1a4   : > { %v476_v47 = vpop.f32.mrb[10].mxu0  ;;  %v637_v48 = vpop.f32.mrb[10].mxu1 }
 0x1a5   : > { %v785_v49 = vmax.f32 %v769_v45, 0.0  ;;  %v754_v50 = vmul.f32 %v738_v46, %v631_v38  ;;  %v723_v51 = vmul.f32 %v707_v44, %v476_v47  ;;  %v478_v52 = vpop.f32.mrb[11].mxu0  ;;  %v639_v53 = vpop.f32.mrb[11].mxu1 }
 0x1a7   : > { %801 = vst [vmem:[%s1391_s5 + $0x18] sm:$0xff] %v785_v49  ;;  %v770_v55 = vadd.f32 %v754_v50, %v633_v43  ;;  %v739_v56 = vadd.f32 %v723_v51, %v478_v52  ;;  %v714_v50 = vld [vmem:[%s1382_s29 + $0x60] sm:$0xff] }
 0x1a8   : > { %v482_v57 = vpop.f32.mrb[12].mxu0  ;;  %v643_v58 = vpop.f32.mrb[12].mxu1 }
 0x1a9   : > { %v786_v59 = vmax.f32 %v770_v55, 0.0  ;;  %v755_v60 = vmul.f32 %v739_v56, %v637_v48  ;;  %v724_v61 = vmul.f32 %v708_v54, %v482_v57  ;;  %v484_v62 = vpop.f32.mrb[13].mxu0  ;;  %v645_v63 = vpop.f32.mrb[13].mxu1 }
 0x1ab   : > { %802 = vst [vmem:[%s1391_s5 + $0x20] sm:$0xff] %v786_v59  ;;  %v771_v2 = vadd.f32 %v755_v60, %v639_v53  ;;  %v740_v3 = vadd.f32 %v724_v61, %v484_v62  ;;  %v715_v60 = vld [vmem:[%s1382_s29 + $0x68] sm:$0xff] }
 0x1ac   : > { %v488_v4 = vpop.f32.mrb[14].mxu0  ;;  %v649_v5 = vpop.f32.mrb[14].mxu1 }
 0x1ad   : > { %v787_v6 = vmax.f32 %v771_v2, 0.0  ;;  %v756_v1 = vmul.f32 %v740_v3, %v643_v58  ;;  %v725_v7 = vmul.f32 %v709_v0, %v488_v4  ;;  %v490_v8 = vpop.f32.mrb[15].mxu0  ;;  %v651_v9 = vpop.f32.mrb[15].mxu1 }
 0x1af   : > { %803 = vst [vmem:[%s1391_s5 + $0x28] sm:$0xff] %v787_v6  ;;  %v772_v11 = vadd.f32 %v756_v1, %v645_v63  ;;  %v741_v12 = vadd.f32 %v725_v7, %v490_v8  ;;  %v716_v1 = vld [vmem:[%s1382_s29 + $0x70] sm:$0xff] }
 0x1b0   : > { %v494_v13 = vpop.f32.mrb[16].mxu0  ;;  %v655_v14 = vpop.f32.mrb[16].mxu1 }
 0x1b1   : > { %v788_v15 = vmax.f32 %v772_v11, 0.0  ;;  %v757_v16 = vmul.f32 %v741_v12, %v649_v5  ;;  %v726_v17 = vmul.f32 %v710_v10, %v494_v13  ;;  %v496_v18 = vpop.f32.mrb[17].mxu0  ;;  %v657_v19 = vpop.f32.mrb[17].mxu1 }
 0x1b3   : > { %804 = vst [vmem:[%s1391_s5 + $0x30] sm:$0xff] %v788_v15  ;;  %v773_v21 = vadd.f32 %v757_v16, %v651_v9  ;;  %v742_v22 = vadd.f32 %v726_v17, %v496_v18  ;;  %v717_v16 = vld [vmem:[%s1382_s29 + $0x78] sm:$0xff] }
 0x1b4   : > { %v500_v23 = vpop.f32.mrb[18].mxu0  ;;  %v661_v24 = vpop.f32.mrb[18].mxu1 }
 0x1b5   : > { %v789_v25 = vmax.f32 %v773_v21, 0.0  ;;  %v758_v26 = vmul.f32 %v742_v22, %v655_v14  ;;  %v727_v27 = vmul.f32 %v711_v20, %v500_v23  ;;  %v502_v28 = vpop.f32.mrb[19].mxu0  ;;  %v663_v29 = vpop.f32.mrb[19].mxu1 }
 0x1b7   : > { %805 = vst [vmem:[%s1391_s5 + $0x38] sm:$0xff] %v789_v25  ;;  %v774_v31 = vadd.f32 %v758_v26, %v657_v19  ;;  %v743_v32 = vadd.f32 %v727_v27, %v502_v28 }
 0x1b8   : > { %v506_v33 = vpop.f32.mrb[20].mxu0  ;;  %v667_v34 = vpop.f32.mrb[20].mxu1 }
 0x1b9   : > { %v790_v35 = vmax.f32 %v774_v31, 0.0  ;;  %v759_v36 = vmul.f32 %v743_v32, %v661_v24  ;;  %v728_v37 = vmul.f32 %v712_v30, %v506_v33  ;;  %v508_v38 = vpop.f32.mrb[21].mxu0  ;;  %v669_v39 = vpop.f32.mrb[21].mxu1 }
 0x1bb   : > { %806 = vst [vmem:[%s1391_s5 + $0x40] sm:$0xff] %v790_v35  ;;  %v775_v41 = vadd.f32 %v759_v36, %v663_v29  ;;  %v744_v42 = vadd.f32 %v728_v37, %v508_v38 }
 0x1bc   : > { %v512_v43 = vpop.f32.mrb[22].mxu0  ;;  %v673_v44 = vpop.f32.mrb[22].mxu1 }
 0x1bd   : > { %v791_v45 = vmax.f32 %v775_v41, 0.0  ;;  %v760_v46 = vmul.f32 %v744_v42, %v667_v34  ;;  %v729_v47 = vmul.f32 %v713_v40, %v512_v43  ;;  %v514_v48 = vpop.f32.mrb[23].mxu0  ;;  %v675_v49 = vpop.f32.mrb[23].mxu1 }
 0x1bf   : > { %807 = vst [vmem:[%s1391_s5 + $0x48] sm:$0xff] %v791_v45  ;;  %v776_v51 = vadd.f32 %v760_v46, %v669_v39  ;;  %v745_v52 = vadd.f32 %v729_v47, %v514_v48 }
 0x1c0   : > { %v518_v53 = vpop.f32.mrb[24].mxu0  ;;  %v679_v54 = vpop.f32.mrb[24].mxu1 }
 0x1c1   : > { %v792_v55 = vmax.f32 %v776_v51, 0.0  ;;  %v761_v56 = vmul.f32 %v745_v52, %v673_v44  ;;  %v730_v57 = vmul.f32 %v714_v50, %v518_v53  ;;  %v520_v58 = vpop.f32.mrb[25].mxu0  ;;  %v681_v59 = vpop.f32.mrb[25].mxu1 }
 0x1c3   : > { %808 = vst [vmem:[%s1391_s5 + $0x50] sm:$0xff] %v792_v55  ;;  %v777_v61 = vadd.f32 %v761_v56, %v675_v49  ;;  %v746_v62 = vadd.f32 %v730_v57, %v520_v58 }
 0x1c4   : > { %v524_v63 = vpop.f32.mrb[26].mxu0  ;;  %v685_v0 = vpop.f32.mrb[26].mxu1 }
 0x1c5   : > { %v793_v2 = vmax.f32 %v777_v61, 0.0  ;;  %v762_v3 = vmul.f32 %v746_v62, %v679_v54  ;;  %v731_v4 = vmul.f32 %v715_v60, %v524_v63  ;;  %v526_v5 = vpop.f32.mrb[27].mxu0  ;;  %v687_v6 = vpop.f32.mrb[27].mxu1 }
 0x1c7   : > { %809 = vst [vmem:[%s1391_s5 + $0x58] sm:$0xff] %v793_v2  ;;  %v778_v7 = vadd.f32 %v762_v3, %v681_v59  ;;  %v747_v8 = vadd.f32 %v731_v4, %v526_v5 }
 0x1c8   : > { %v530_v9 = vpop.f32.mrb[28].mxu0  ;;  %v691_v10 = vpop.f32.mrb[28].mxu1 }
 0x1c9   : > { %v794_v11 = vmax.f32 %v778_v7, 0.0  ;;  %v763_v12 = vmul.f32 %v747_v8, %v685_v0  ;;  %v732_v13 = vmul.f32 %v716_v1, %v530_v9  ;;  %v532_v14 = vpop.f32.mrb[29].mxu0  ;;  %v693_v15 = vpop.f32.mrb[29].mxu1 }
 0x1cb   : > { %810 = vst [vmem:[%s1391_s5 + $0x60] sm:$0xff] %v794_v11  ;;  %v779_v17 = vadd.f32 %v763_v12, %v687_v6  ;;  %v748_v18 = vadd.f32 %v732_v13, %v532_v14 }
 0x1cc   : > { %v536_v19 = vpop.f32.mrb[30].mxu0  ;;  %v697_v20 = vpop.f32.mrb[30].mxu1 }
 0x1cd   : > { %v795_v21 = vmax.f32 %v779_v17, 0.0  ;;  %v764_v22 = vmul.f32 %v748_v18, %v691_v10  ;;  %v733_v23 = vmul.f32 %v717_v16, %v536_v19  ;;  %v538_v24 = vpop.f32.mrb[31].mxu0  ;;  %v699_v25 = vpop.f32.mrb[31].mxu1 }
 0x1cf   : > { %811 = vst [vmem:[%s1391_s5 + $0x68] sm:$0xff] %v795_v21  ;;  %v780_v26 = vadd.f32 %v764_v22, %v693_v15  ;;  %v749_v27 = vadd.f32 %v733_v23, %v538_v24 }
 0x1d1   : > { %v796_v28 = vmax.f32 %v780_v26, 0.0  ;;  %v765_v29 = vmul.f32 %v749_v27, %v697_v20 }
 0x1d3   : > { %812 = vst [vmem:[%s1391_s5 + $0x70] sm:$0xff] %v796_v28  ;;  %v781_v30 = vadd.f32 %v765_v29, %v699_v25 }
 0x1d5   : > { %v797_v31 = vmax.f32 %v781_v30, 0.0 }
 0x1d7   : > { %813 = vst [vmem:[%s1391_s5 + $0x78] sm:$0xff] %v797_v31 }
 0x1d8   : > { %1086 = shalt.err (!%p1083_p7)
}
 0x1d9   : > { %s1087_s24 = scalar_lea.hbm %s1425_s10, 2048  ;;  %s1091_s27 = scalar_lea.hbm %s1476_s3, 4096 }
 0x1da   : > { %p1088_p8 = scmp.ne.s32.totalorder %s1425_s10, %s1087_s24  ;;  %p1092_p1 = scmp.lt.u32.totalorder %s1425_s10, %s1476_s3 }
 0x1db   : > { %p1093_p0 = scmp.lt.u32.totalorder %s1091_s27, %s1087_s24  ;;  %p1095_p6 = scmp.lt.u32.totalorder %s1087_s24, %s1425_s10 }
 0x1dc   : > { %p1089_p11 = pnand %p1088_p8, %p1487_p9 }
 0x1dd   : > { %p1094_p5 = por %p1093_p0, %p1092_p1 }
 0x1de   : > { %p1090_p13 = pneg %p1089_p11 }
 0x1df   : > { %p1096_p10 = por %p1095_p6, %p1094_p5 }
 0x1e1   : > { %p1097_p12 = pnand %p1096_p10, %p1090_p13 }
 0x1e3   : > { %1100 = shalt.err (!%p1097_p12)
}
 0x1e4   : > { %s1147_s30 = smov 128   ;;  %s1148_s4 = smov 8  }
 0x1e5   : > { %991 = dma.vmem_to_hbm [thread:$0]  (%p1487_p9), %s1427_s7, 2048, %s1425_s10, %s1432_s11, %s1147_s30, %s1147_s30, %s1148_s4  }
 0x1e6 PF: > { %p1003_p2 = scmp.ge.s32.totalorder %s1139_s15, 2  ;;  %s843_s5 = sand.u32 1, %s1127_s12  }
 0x1e7   : > { %p1488_p3 = scmp.ne.s32.totalorder %s1481_s23, 0  ;;  %s844_s6 = scalar_lea.sflag [#allocation4], %s843_s5 }
 0x1e9   : > { %p998_p4 = pnand %p1003_p2, %p1488_p3 }
 0x1eb   : > { %1122 = dma.done.wait (!%p998_p4), %s844_s6, 2048  }
 0x1ec   : > { %1124 = vsyncadd (!%p998_p4), %s844_s6, 4294965248  ;;  %p14_p7 = scmp.ge.s32.totalorder %s1194_s18, 4   ;;  %s1489_s12 = smov %s1131_s13 }
 0x1ed   : > { %s1490_s13 = smov %s1135_s14  ;;  %s1491_s14 = smov %s1205_s21 }
 0x1ee   : > { %s1492_s15 = smov %s1194_s18  ;;  %16 = sbr.rel (!%p14_p7) target bundleno = 4 (0x4), region = 75 }
 0x1f5   :  { %849 = vsyncpa [#allocation3], 1 }
 0x1f6   :  { %851 = vsyncpa [#allocation3 + $0x1], 1 }
 0x1f7   :  { %852 = vsyncpa [#allocation4], 1 }
 0x1f8   :  { %854 = vsyncpa [#allocation4 + $0x1], 1 }

</bundles_post_ra>
